<compile_context>
chip_gen: v5e
topology: v5e:2x2
jax: 0.10.0
libtpu: 0.0.40
codegen_flags: <defaults>
</compile_context>

<pallas_src>
import functools

import jax
import jax.numpy as jnp
from jax import lax
from jax.experimental import pallas as pl
from jax.experimental.pallas import tpu as pltpu


def mha_kernel(x_ref, wqkv_ref, wout_ref, bout_ref, o_ref, *,
               num_heads, batch, seq_len):
    # x_ref:    (B*T, d_in)            activations (compute dtype: bf16 or f32)
    # wqkv_ref: (3, H, d_in, head_dim) [Wq (pre-scaled) | Wk | Wv], head-major
    # wout_ref: (H, head_dim, d_out)   out_proj weight split per head
    # bout_ref: (1, d_out)             out_proj bias (f32)
    # o_ref:    (B, T, d_out)          lane-dense output block
    H, B, T = num_heads, batch, seq_len
    BT = B * T
    d_in = x_ref.shape[-1]
    cdt = x_ref.dtype                        # MXU operand dtype

    x = x_ref[...]                           # (BT, d_in)
    # Broadcast x once over the head axis -> every per-head matmul below is a
    # clean head-batched MXU chain (no lane-axis head slicing anywhere).
    xh = jnp.broadcast_to(x[None], (H, BT, d_in))

    # Head-batched QKV projection, f32 accumulation.  The 1/sqrt(head_dim)
    # scale is already folded into wqkv_ref[0] by the wrapper.
    q = jnp.einsum('htd,hdf->htf', xh, wqkv_ref[0],
                   preferred_element_type=jnp.float32).astype(cdt)
    k = jnp.einsum('htd,hdf->htf', xh, wqkv_ref[1],
                   preferred_element_type=jnp.float32).astype(cdt)
    v = jnp.einsum('htd,hdf->htf', xh, wqkv_ref[2],
                   preferred_element_type=jnp.float32).astype(cdt)

    # Causal mask, built once and shared across heads / batches.
    row = lax.broadcasted_iota(jnp.int32, (T, T), 0)
    col = lax.broadcasted_iota(jnp.int32, (T, T), 1)
    causal = (col > row)[None]               # (1, T, T), broadcast over heads
    neg_big = jnp.float32(-1e30)             # finite sentinel (bf16/f32 safe)

    wout = wout_ref[...]                      # (H, head_dim, d_out)
    bias = bout_ref[...].astype(jnp.float32)  # (1, d_out)

    # Static loop over the (tiny) batch; row slices of q/k/v are sublane
    # slices (T is 8-aligned) and therefore cheap.
    # TODO(synk): for large B make this a grid axis (and flash-tile T / use
    # lax.fori_loop(..., unroll=True) to bound vreg live ranges).
    for b in range(B):
        lo = b * T
        qb = q[:, lo:lo + T, :]               # (H, T, head_dim)
        kb = k[:, lo:lo + T, :]
        vb = v[:, lo:lo + T, :]

        # Scores + numerically stable softmax, all in f32.
        s = jnp.einsum('htd,hsd->hts', qb, kb,
                       preferred_element_type=jnp.float32)        # (H, T, T)
        s = jnp.where(causal, neg_big, s)
        m = jnp.max(s, axis=-1, keepdims=True)
        e = jnp.exp(s - m)
        denom = jnp.sum(e, axis=-1, keepdims=True)

        # Unnormalized context; fold the exact reciprocal into the small
        # (H, T, head_dim) tensor instead of the (H, T, T) weights.
        ctx = jnp.einsum('hts,hsd->htd', e.astype(cdt), vb,
                         preferred_element_type=jnp.float32)      # (H, T, hd)
        ctx = ctx * pl.reciprocal(denom)                          # exact 1/x

        # Fused out_proj: per-head partial products summed over the head axis
        # (replaces the lane-axis concatenate + matmul).
        outh = jnp.einsum('htd,hde->hte', ctx.astype(cdt), wout,
                          preferred_element_type=jnp.float32)     # (H, T, do)
        o_ref[b] = (jnp.sum(outh, axis=0) + bias).astype(o_ref.dtype)


def pack_mha_weights(w_query, w_key, w_value, w_out, num_heads):
    """Pack x@W-layout weights for the kernel (done once, outside the kernel).

    w_query/w_key/w_value: (d_in, d_out); w_out: (d_out, d_out).
    Returns (w_qkv_heads (3, H, d_in, head_dim), w_out_heads (H, head_dim, d_out)).
    The 1/sqrt(head_dim) attention scale is folded into the query weights.
    """
    d_in, d_out = w_query.shape
    head_dim = d_out // num_heads
    scale = 1.0 / (head_dim ** 0.5)

    def split_heads(w):                       # (d_in, d_out) -> (H, d_in, hd)
        return w.reshape(d_in, num_heads, head_dim).transpose(1, 0, 2)

    w_qkv_heads = jnp.stack(
        [split_heads(w_query * scale), split_heads(w_key), split_heads(w_value)],
        axis=0)                               # (3, H, d_in, head_dim)
    w_out_heads = w_out.reshape(num_heads, head_dim, d_out)
    return w_qkv_heads, w_out_heads


def multi_head_attention(x, w_qkv_heads, w_out_heads, b_out, num_heads,
                         compute_dtype=jnp.bfloat16):
    """x: (B, T, d_in) -> (B, T, d_out) in x.dtype."""
    B, T, d_in = x.shape
    _, H, _, head_dim = w_qkv_heads.shape
    d_out = H * head_dim

    x2 = x.reshape(B * T, d_in).astype(compute_dtype)
    wqkv = w_qkv_heads.astype(compute_dtype)
    wout = w_out_heads.astype(compute_dtype)
    bout = b_out.reshape(1, d_out).astype(jnp.float32)

    kernel = functools.partial(mha_kernel, num_heads=H, batch=B, seq_len=T)

    return pl.pallas_call(
        kernel,
        out_shape=jax.ShapeDtypeStruct((B, T, d_out), x.dtype),
        grid_spec=pltpu.PrefetchScalarGridSpec(
            num_scalar_prefetch=0,
            grid=(1,),   # single step: no per-step pipeline overhead (v5e/v6e)
            in_specs=[
                pl.BlockSpec((B * T, d_in), lambda i: (0, 0)),
                pl.BlockSpec((3, H, d_in, head_dim), lambda i: (0, 0, 0, 0)),
                pl.BlockSpec((H, head_dim, d_out), lambda i: (0, 0, 0)),
                pl.BlockSpec((1, d_out), lambda i: (0, 0)),
            ],
            out_specs=pl.BlockSpec((B, T, d_out), lambda i: (0, 0, 0)),
        ),
        compiler_params=pltpu.CompilerParams(
            dimension_semantics=("arbitrary",)),
    )(x2, wqkv, wout, bout)


def reference(x, w_query, w_key, w_value, w_out, b_out, num_heads):
    """Plain-JAX mirror of the PyTorch module in eval mode (exact f32 matmuls)."""
    B, T, _ = x.shape
    d_out = w_out.shape[0]
    hd = d_out // num_heads
    hi = jax.lax.Precision.HIGHEST

    def proj(w):
        y = jnp.einsum('btd,de->bte', x, w, precision=hi)
        return y.reshape(B, T, num_heads, hd).transpose(0, 2, 1, 3)

    q, k, v = proj(w_query), proj(w_key), proj(w_value)
    s = jnp.einsum('bhtd,bhsd->bhts', q, k, precision=hi)          # (B,H,T,T)
    mask = jnp.triu(jnp.ones((T, T), dtype=bool), k=1)
    s = jnp.where(mask, -jnp.inf, s)
    w = jax.nn.softmax(s / (hd ** 0.5), axis=-1)
    ctx = jnp.einsum('bhts,bhsd->bthd', w, v, precision=hi).reshape(B, T, d_out)
    return jnp.einsum('bte,ef->btf', ctx, w_out, precision=hi) + b_out


if __name__ == "__main__":
    # Small shapes consistent with the module: d_out divisible by num_heads.
    B, T, d_in, d_out, H = 2, 8, 32, 64, 4
    # context_length = T, dropout = 0.0 (eval mode -> identity), qkv_bias=False

    key = jax.random.PRNGKey(0)
    kx, kq, kk, kv, kw, kb = jax.random.split(key, 6)
    x = jax.random.normal(kx, (B, T, d_in), dtype=jnp.float32)

    # nn.Linear weights stored pre-transposed as (in, out) so y = x @ W.
    bound_in = 1.0 / (d_in ** 0.5)
    w_query = jax.random.uniform(kq, (d_in, d_out), jnp.float32, -bound_in, bound_in)
    w_key = jax.random.uniform(kk, (d_in, d_out), jnp.float32, -bound_in, bound_in)
    w_value = jax.random.uniform(kv, (d_in, d_out), jnp.float32, -bound_in, bound_in)
    bound_out = 1.0 / (d_out ** 0.5)
    w_out = jax.random.uniform(kw, (d_out, d_out), jnp.float32, -bound_out, bound_out)
    b_out = jax.random.uniform(kb, (d_out,), jnp.float32, -bound_out, bound_out)

    w_qkv_heads, w_out_heads = pack_mha_weights(w_query, w_key, w_value, w_out, H)
    ref = reference(x, w_query, w_key, w_value, w_out, b_out, H)

    # 1) f32 MXU operands: tight parity with the PyTorch-module reference.
    out_f32 = multi_head_attention(x, w_qkv_heads, w_out_heads, b_out, H,
                                   compute_dtype=jnp.float32)
    jax.block_until_ready(out_f32)
    assert out_f32.shape == (B, T, d_out), out_f32.shape
    assert jnp.allclose(out_f32, ref, atol=5e-3, rtol=5e-3), "f32 kernel mismatch"

    # 2) bf16 MXU operands (f32 accumulation / f32 softmax): the fast path.
    out_bf16 = multi_head_attention(x, w_qkv_heads, w_out_heads, b_out, H,
                                    compute_dtype=jnp.bfloat16)
    jax.block_until_ready(out_bf16)
    assert out_bf16.shape == (B, T, d_out), out_bf16.shape
    assert jnp.allclose(out_bf16, ref, atol=6e-2, rtol=6e-2), "bf16 kernel mismatch"

    print("KERNEL_OK")
</pallas_src>

<mosaic_0001>
module attributes {stable_mosaic.version = 11 : i64} {
  func.func @mha_kernel(%arg0: i32, %arg1: memref<16x32xf32, #tpu.memory_space<vmem>>, %arg2: memref<3x4x32x16xf32, #tpu.memory_space<vmem>>, %arg3: memref<4x16x64xf32, #tpu.memory_space<vmem>>, %arg4: memref<1x64xf32, #tpu.memory_space<vmem>>, %arg5: memref<2x8x64xf32, #tpu.memory_space<vmem>>) attributes {dimension_semantics = [#tpu.dimension_semantics<arbitrary>], iteration_bounds = array<i64: 1>, scalar_prefetch = 0 : i64, scratch_operands = 0 : i64, tpu.core_type = #tpu.core_type<tc>, window_params = [{pipeline_mode = #tpu.pipeline_mode<synchronous>, transform_indices = @transform_0, window_bounds = array<i64: 16, 32>}, {pipeline_mode = #tpu.pipeline_mode<synchronous>, transform_indices = @transform_1, window_bounds = array<i64: 3, 4, 32, 16>}, {pipeline_mode = #tpu.pipeline_mode<synchronous>, transform_indices = @transform_2, window_bounds = array<i64: 4, 16, 64>}, {pipeline_mode = #tpu.pipeline_mode<synchronous>, transform_indices = @transform_3, window_bounds = array<i64: 1, 64>}, {pipeline_mode = #tpu.pipeline_mode<synchronous>, transform_indices = @transform_4, window_bounds = array<i64: 2, 8, 64>}]} {
    %c0 = arith.constant 0 : index
    %c0_0 = arith.constant 0 : index
    %0 = vector.load %arg1[%c0, %c0_0] : memref<16x32xf32, #tpu.memory_space<vmem>>, vector<16x32xf32>
    %1 = vector.shape_cast %0 : vector<16x32xf32> to vector<1x16x32xf32>
    %2 = vector.shape_cast %1 : vector<1x16x32xf32> to vector<1x16x32xf32>
    %3 = vector.broadcast %2 : vector<1x16x32xf32> to vector<4x16x32xf32>
    %c0_1 = arith.constant 0 : index
    %c0_2 = arith.constant 0 : index
    %c0_3 = arith.constant 0 : index
    %c0_4 = arith.constant 0 : index
    %4 = vector.load %arg2[%c0_1, %c0_2, %c0_3, %c0_4] : memref<3x4x32x16xf32, #tpu.memory_space<vmem>>, vector<1x4x32x16xf32>
    %5 = vector.shape_cast %4 : vector<1x4x32x16xf32> to vector<4x32x16xf32>
    "tpu.trace_start"() <{level = 10 : i32, message = "htd,hdf->htf"}> : () -> ()
    %cst = arith.constant dense<0.000000e+00> : vector<4x16x16xf32>
    %6 = tpu.matmul %3, %5, %cst {dimension_numbers = #tpu.dot_dimension_numbers<[2], [1], [1], [2], [0, 0, 0, 1, 1, 2], [0], [0]>} : vector<4x16x32xf32>, vector<4x32x16xf32>, vector<4x16x16xf32> -> vector<4x16x16xf32>
    "tpu.trace_stop"() : () -> ()
    %c1 = arith.constant 1 : index
    %c0_5 = arith.constant 0 : index
    %c0_6 = arith.constant 0 : index
    %c0_7 = arith.constant 0 : index
    %7 = vector.load %arg2[%c1, %c0_5, %c0_6, %c0_7] : memref<3x4x32x16xf32, #tpu.memory_space<vmem>>, vector<1x4x32x16xf32>
    %8 = vector.shape_cast %7 : vector<1x4x32x16xf32> to vector<4x32x16xf32>
    "tpu.trace_start"() <{level = 10 : i32, message = "htd,hdf->htf"}> : () -> ()
    %cst_8 = arith.constant dense<0.000000e+00> : vector<4x16x16xf32>
    %9 = tpu.matmul %3, %8, %cst_8 {dimension_numbers = #tpu.dot_dimension_numbers<[2], [1], [1], [2], [0, 0, 0, 1, 1, 2], [0], [0]>} : vector<4x16x32xf32>, vector<4x32x16xf32>, vector<4x16x16xf32> -> vector<4x16x16xf32>
    "tpu.trace_stop"() : () -> ()
    %c2 = arith.constant 2 : index
    %c0_9 = arith.constant 0 : index
    %c0_10 = arith.constant 0 : index
    %c0_11 = arith.constant 0 : index
    %10 = vector.load %arg2[%c2, %c0_9, %c0_10, %c0_11] : memref<3x4x32x16xf32, #tpu.memory_space<vmem>>, vector<1x4x32x16xf32>
    %11 = vector.shape_cast %10 : vector<1x4x32x16xf32> to vector<4x32x16xf32>
    "tpu.trace_start"() <{level = 10 : i32, message = "htd,hdf->htf"}> : () -> ()
    %cst_12 = arith.constant dense<0.000000e+00> : vector<4x16x16xf32>
    %12 = tpu.matmul %3, %11, %cst_12 {dimension_numbers = #tpu.dot_dimension_numbers<[2], [1], [1], [2], [0, 0, 0, 1, 1, 2], [0], [0]>} : vector<4x16x32xf32>, vector<4x32x16xf32>, vector<4x16x16xf32> -> vector<4x16x16xf32>
    "tpu.trace_stop"() : () -> ()
    %13 = tpu.iota {dimensions = array<i32: 0>} : vector<8x8xi32>
    %14 = tpu.iota {dimensions = array<i32: 1>} : vector<8x8xi32>
    %15 = arith.cmpi sgt, %14, %13 : vector<8x8xi32>
    %16 = vector.shape_cast %15 : vector<8x8xi1> to vector<1x8x8xi1>
    %c0_13 = arith.constant 0 : index
    %c0_14 = arith.constant 0 : index
    %c0_15 = arith.constant 0 : index
    %17 = vector.load %arg3[%c0_13, %c0_14, %c0_15] : memref<4x16x64xf32, #tpu.memory_space<vmem>>, vector<4x16x64xf32>
    %c0_16 = arith.constant 0 : index
    %c0_17 = arith.constant 0 : index
    %18 = vector.load %arg4[%c0_16, %c0_17] : memref<1x64xf32, #tpu.memory_space<vmem>>, vector<1x64xf32>
    %19 = vector.extract_strided_slice %6 {offsets = [0, 0, 0], sizes = [4, 8, 16], strides = [1, 1, 1]} : vector<4x16x16xf32> to vector<4x8x16xf32>
    %20 = vector.extract_strided_slice %9 {offsets = [0, 0, 0], sizes = [4, 8, 16], strides = [1, 1, 1]} : vector<4x16x16xf32> to vector<4x8x16xf32>
    %21 = vector.extract_strided_slice %12 {offsets = [0, 0, 0], sizes = [4, 8, 16], strides = [1, 1, 1]} : vector<4x16x16xf32> to vector<4x8x16xf32>
    "tpu.trace_start"() <{level = 10 : i32, message = "htd,hsd->hts"}> : () -> ()
    %cst_18 = arith.constant dense<0.000000e+00> : vector<4x8x8xf32>
    %22 = tpu.matmul %19, %20, %cst_18 {dimension_numbers = #tpu.dot_dimension_numbers<[2], [2], [1], [1], [0, 0, 0, 1, 1, 1], [0], [0]>} : vector<4x8x16xf32>, vector<4x8x16xf32>, vector<4x8x8xf32> -> vector<4x8x8xf32>
    %cst_19 = arith.constant -1.000000e+30 : f32
    "tpu.trace_stop"() : () -> ()
    %23 = vector.shape_cast %16 : vector<1x8x8xi1> to vector<1x8x8xi1>
    %24 = vector.broadcast %23 : vector<1x8x8xi1> to vector<4x8x8xi1>
    %25 = vector.broadcast %cst_19 : f32 to vector<4x8x8xf32>
    %26 = arith.select %24, %25, %22 : vector<4x8x8xi1>, vector<4x8x8xf32>
    %cst_20 = arith.constant dense<0xFF800000> : vector<4x8xf32>
    %27 = vector.multi_reduction <maximumf>, %26, %cst_20 [2] : vector<4x8x8xf32> to vector<4x8xf32>
    %28 = vector.shape_cast %27 : vector<4x8xf32> to vector<4x8x1xf32>
    %29 = vector.broadcast %28 : vector<4x8x1xf32> to vector<4x8x8xf32>
    %30 = arith.subf %26, %29 : vector<4x8x8xf32>
    %31 = math.exp %30 : vector<4x8x8xf32>
    %cst_21 = arith.constant dense<0.000000e+00> : vector<4x8xf32>
    %32 = vector.multi_reduction <add>, %31, %cst_21 [2] : vector<4x8x8xf32> to vector<4x8xf32>
    %33 = vector.shape_cast %32 : vector<4x8xf32> to vector<4x8x1xf32>
    "tpu.trace_start"() <{level = 10 : i32, message = "hts,hsd->htd"}> : () -> ()
    %cst_22 = arith.constant dense<0.000000e+00> : vector<4x8x16xf32>
    %34 = tpu.matmul %31, %21, %cst_22 {dimension_numbers = #tpu.dot_dimension_numbers<[2], [1], [1], [2], [0, 0, 0, 1, 1, 2], [0], [0]>} : vector<4x8x8xf32>, vector<4x8x16xf32>, vector<4x8x16xf32> -> vector<4x8x16xf32>
    "tpu.trace_stop"() : () -> ()
    %35 = tpu.reciprocal %33 : vector<4x8x1xf32> -> vector<4x8x1xf32>
    %36 = vector.broadcast %35 : vector<4x8x1xf32> to vector<4x8x16xf32>
    %37 = arith.mulf %34, %36 : vector<4x8x16xf32>
    "tpu.trace_start"() <{level = 10 : i32, message = "htd,hde->hte"}> : () -> ()
    %cst_23 = arith.constant dense<0.000000e+00> : vector<4x8x64xf32>
    %38 = tpu.matmul %37, %17, %cst_23 {dimension_numbers = #tpu.dot_dimension_numbers<[2], [1], [1], [2], [0, 0, 0, 1, 1, 2], [0], [0]>} : vector<4x8x16xf32>, vector<4x16x64xf32>, vector<4x8x64xf32> -> vector<4x8x64xf32>
    "tpu.trace_stop"() : () -> ()
    %cst_24 = arith.constant dense<0.000000e+00> : vector<8x64xf32>
    %39 = vector.multi_reduction <add>, %38, %cst_24 [0] : vector<4x8x64xf32> to vector<8x64xf32>
    %40 = vector.broadcast %18 : vector<1x64xf32> to vector<8x64xf32>
    %41 = arith.addf %39, %40 : vector<8x64xf32>
    %c0_25 = arith.constant 0 : index
    %c0_26 = arith.constant 0 : index
    %c0_27 = arith.constant 0 : index
    %42 = vector.load %arg5[%c0_25, %c0_26, %c0_27] : memref<2x8x64xf32, #tpu.memory_space<vmem>>, vector<1x8x64xf32>
    %43 = vector.shape_cast %42 : vector<1x8x64xf32> to vector<8x64xf32>
    %44 = vector.shape_cast %41 : vector<8x64xf32> to vector<1x8x64xf32>
    tpu.vector_store %arg5[%c0_25, %c0_26, %c0_27], %44 {strides = array<i32>} : memref<2x8x64xf32, #tpu.memory_space<vmem>>, vector<1x8x64xf32>,
    %45 = vector.extract_strided_slice %6 {offsets = [0, 8, 0], sizes = [4, 8, 16], strides = [1, 1, 1]} : vector<4x16x16xf32> to vector<4x8x16xf32>
    %46 = vector.extract_strided_slice %9 {offsets = [0, 8, 0], sizes = [4, 8, 16], strides = [1, 1, 1]} : vector<4x16x16xf32> to vector<4x8x16xf32>
    %47 = vector.extract_strided_slice %12 {offsets = [0, 8, 0], sizes = [4, 8, 16], strides = [1, 1, 1]} : vector<4x16x16xf32> to vector<4x8x16xf32>
    "tpu.trace_start"() <{level = 10 : i32, message = "htd,hsd->hts"}> : () -> ()
    %cst_28 = arith.constant dense<0.000000e+00> : vector<4x8x8xf32>
    %48 = tpu.matmul %45, %46, %cst_28 {dimension_numbers = #tpu.dot_dimension_numbers<[2], [2], [1], [1], [0, 0, 0, 1, 1, 1], [0], [0]>} : vector<4x8x16xf32>, vector<4x8x16xf32>, vector<4x8x8xf32> -> vector<4x8x8xf32>
    %cst_29 = arith.constant -1.000000e+30 : f32
    "tpu.trace_stop"() : () -> ()
    %49 = vector.shape_cast %16 : vector<1x8x8xi1> to vector<1x8x8xi1>
    %50 = vector.broadcast %49 : vector<1x8x8xi1> to vector<4x8x8xi1>
    %51 = vector.broadcast %cst_29 : f32 to vector<4x8x8xf32>
    %52 = arith.select %50, %51, %48 : vector<4x8x8xi1>, vector<4x8x8xf32>
    %cst_30 = arith.constant dense<0xFF800000> : vector<4x8xf32>
    %53 = vector.multi_reduction <maximumf>, %52, %cst_30 [2] : vector<4x8x8xf32> to vector<4x8xf32>
    %54 = vector.shape_cast %53 : vector<4x8xf32> to vector<4x8x1xf32>
    %55 = vector.broadcast %54 : vector<4x8x1xf32> to vector<4x8x8xf32>
    %56 = arith.subf %52, %55 : vector<4x8x8xf32>
    %57 = math.exp %56 : vector<4x8x8xf32>
    %cst_31 = arith.constant dense<0.000000e+00> : vector<4x8xf32>
    %58 = vector.multi_reduction <add>, %57, %cst_31 [2] : vector<4x8x8xf32> to vector<4x8xf32>
    %59 = vector.shape_cast %58 : vector<4x8xf32> to vector<4x8x1xf32>
    "tpu.trace_start"() <{level = 10 : i32, message = "hts,hsd->htd"}> : () -> ()
    %cst_32 = arith.constant dense<0.000000e+00> : vector<4x8x16xf32>
    %60 = tpu.matmul %57, %47, %cst_32 {dimension_numbers = #tpu.dot_dimension_numbers<[2], [1], [1], [2], [0, 0, 0, 1, 1, 2], [0], [0]>} : vector<4x8x8xf32>, vector<4x8x16xf32>, vector<4x8x16xf32> -> vector<4x8x16xf32>
    "tpu.trace_stop"() : () -> ()
    %61 = tpu.reciprocal %59 : vector<4x8x1xf32> -> vector<4x8x1xf32>
    %62 = vector.broadcast %61 : vector<4x8x1xf32> to vector<4x8x16xf32>
    %63 = arith.mulf %60, %62 : vector<4x8x16xf32>
    "tpu.trace_start"() <{level = 10 : i32, message = "htd,hde->hte"}> : () -> ()
    %cst_33 = arith.constant dense<0.000000e+00> : vector<4x8x64xf32>
    %64 = tpu.matmul %63, %17, %cst_33 {dimension_numbers = #tpu.dot_dimension_numbers<[2], [1], [1], [2], [0, 0, 0, 1, 1, 2], [0], [0]>} : vector<4x8x16xf32>, vector<4x16x64xf32>, vector<4x8x64xf32> -> vector<4x8x64xf32>
    "tpu.trace_stop"() : () -> ()
    %cst_34 = arith.constant dense<0.000000e+00> : vector<8x64xf32>
    %65 = vector.multi_reduction <add>, %64, %cst_34 [0] : vector<4x8x64xf32> to vector<8x64xf32>
    %66 = vector.broadcast %18 : vector<1x64xf32> to vector<8x64xf32>
    %67 = arith.addf %65, %66 : vector<8x64xf32>
    %c1_35 = arith.constant 1 : index
    %c0_36 = arith.constant 0 : index
    %c0_37 = arith.constant 0 : index
    %68 = vector.load %arg5[%c1_35, %c0_36, %c0_37] : memref<2x8x64xf32, #tpu.memory_space<vmem>>, vector<1x8x64xf32>
    %69 = vector.shape_cast %68 : vector<1x8x64xf32> to vector<8x64xf32>
    %70 = vector.shape_cast %67 : vector<8x64xf32> to vector<1x8x64xf32>
    tpu.vector_store %arg5[%c1_35, %c0_36, %c0_37], %70 {strides = array<i32>} : memref<2x8x64xf32, #tpu.memory_space<vmem>>, vector<1x8x64xf32>,
    return
  }
  func.func @transform_0(%arg0: i32) -> (i32, i32) {
    %c0_i32 = arith.constant 0 : i32
    %c0_i32_0 = arith.constant 0 : i32
    %c0_i32_1 = arith.constant 0 : i32
    return %c0_i32, %c0_i32_0 : i32, i32
  }
  func.func @transform_1(%arg0: i32) -> (i32, i32, i32, i32) {
    %c0_i32 = arith.constant 0 : i32
    %c0_i32_0 = arith.constant 0 : i32
    %c0_i32_1 = arith.constant 0 : i32
    %c0_i32_2 = arith.constant 0 : i32
    %c0_i32_3 = arith.constant 0 : i32
    return %c0_i32, %c0_i32_0, %c0_i32_1, %c0_i32_2 : i32, i32, i32, i32
  }
  func.func @transform_2(%arg0: i32) -> (i32, i32, i32) {
    %c0_i32 = arith.constant 0 : i32
    %c0_i32_0 = arith.constant 0 : i32
    %c0_i32_1 = arith.constant 0 : i32
    %c0_i32_2 = arith.constant 0 : i32
    return %c0_i32, %c0_i32_0, %c0_i32_1 : i32, i32, i32
  }
  func.func @transform_3(%arg0: i32) -> (i32, i32) {
    %c0_i32 = arith.constant 0 : i32
    %c0_i32_0 = arith.constant 0 : i32
    %c0_i32_1 = arith.constant 0 : i32
    return %c0_i32, %c0_i32_0 : i32, i32
  }
  func.func @transform_4(%arg0: i32) -> (i32, i32, i32) {
    %c0_i32 = arith.constant 0 : i32
    %c0_i32_0 = arith.constant 0 : i32
    %c0_i32_1 = arith.constant 0 : i32
    %c0_i32_2 = arith.constant 0 : i32
    return %c0_i32, %c0_i32_0, %c0_i32_1 : i32, i32, i32
  }
}

</mosaic_0001>

<bundles_post_ra>
// kernel: tpu_custom_call.1
= control target key start
LH: loop header
LB: loop body
LE: loop exit
PB: predicated region body
PF: predicated region fallthrough
CT: control target
= control target key end

     0   :  { %vm36_vm0 = vcmask 261120   ;;  %s1748_s0 = inlined_call_operand.vmem [shape: f32[16,32], index: 0, kind: input, shape index: {}]   ;;  %s1749_s1 = inlined_call_operand.vmem [shape: f32[3,4,32,16], index: 1, kind: input, shape index: {}]   ;;  %s1750_s2 = inlined_call_operand.vmem [shape: f32[4,16,64], index: 2, kind: input, shape index: {}]   ;;  %s1751_s3 = inlined_call_operand.vmem [shape: f32[1,64], index: 3, kind: input, shape index: {}]   ;;  %s1752_s4 = inlined_call_operand.hbm [shape: f32[2,8,64], index: 4, kind: output, shape index: {}]  }
   0x1   :  { %v23_v0 = vld [vmem:[%s1749_s1 + $0x18] sm:$0xff]  ;;  %v22_v3 = vld [vmem:[%s1749_s1 + $0x10] sm:$0xff]  ;;  %v21_v6 = vld [vmem:[%s1749_s1 + $0x8] sm:$0xff] }
   0x2   :  { %v31_v1 = vld [vmem:[%s1749_s1 + $0x58] sm:$0xff]  ;;  %55 = vmatpush.msra.mxu0 %v23_v0  ;;  %v30_v4 = vld [vmem:[%s1749_s1 + $0x50] sm:$0xff]  ;;  %v29_v7 = vld [vmem:[%s1749_s1 + $0x48] sm:$0xff] }
   0x3   :  { %v35_v2 = vld [vmem:[%s1749_s1 + $0x78] sm:$0xff]  ;;  %101 = vmatpush.msra.mxu2 %v31_v1  ;;  %v34_v5 = vld [vmem:[%s1749_s1 + $0x70] sm:$0xff]  ;;  %v33_v8 = vld [vmem:[%s1749_s1 + $0x68] sm:$0xff] }
   0x4   :  { %124 = vmatpush.msra.mxu3 %v35_v2  ;;  %56 = vmatpush.msra.mxu0 %v22_v3  ;;  %v20_v9 = vld [vmem:[%s1749_s1] sm:$0xff]  ;;  %v27_v11 = vld [vmem:[%s1749_s1 + $0x38] sm:$0xff]  ;;  %v26_v14 = vld [vmem:[%s1749_s1 + $0x30] sm:$0xff] }
   0x5   :  { %102 = vmatpush.msra.mxu2 %v30_v4  ;;  %v28_v10 = vld [vmem:[%s1749_s1 + $0x40] sm:$0xff]  ;;  %78 = vmatpush.msra.mxu1 %v27_v11  ;;  %v1199_v15 = vld [vmem:[%s1749_s1 + $0x98] sm:$0xff]  ;;  %v25_v18 = vld [vmem:[%s1749_s1 + $0x28] sm:$0xff] }
   0x6   :  { %125 = vmatpush.msra.mxu3 %v34_v5  ;;  %57 = vmatpush.msra.mxu0 %v21_v6  ;;  %v32_v12 = vld [vmem:[%s1749_s1 + $0x60] sm:$0xff]  ;;  %v1207_v16 = vld [vmem:[%s1749_s1 + $0xd8] sm:$0xff]  ;;  %v1198_v19 = vld [vmem:[%s1749_s1 + $0x90] sm:$0xff] }
   0x7   :  { %103 = vmatpush.msra.mxu2 %v29_v7  ;;  %v1408_v13 = vld [vmem:[%s1748_s0] sm:$0xff]  ;;  %v1211_v17 = vld [vmem:[%s1749_s1 + $0xf8] sm:$0xff]  ;;  %79 = vmatpush.msra.mxu1 %v26_v14  ;;  %v1206_v20 = vld [vmem:[%s1749_s1 + $0xd0] sm:$0xff] }
   0x8   :  { %126 = vmatpush.msra.mxu3 %v33_v8  ;;  %58 = vmatpush.msra.mxu0 %v20_v9  ;;  %v1210_v21 = vld [vmem:[%s1749_s1 + $0xf0] sm:$0xff]  ;;  %v24_v22 = vld [vmem:[%s1749_s1 + $0x20] sm:$0xff]  ;;  %v1197_v23 = vld [vmem:[%s1749_s1 + $0x88] sm:$0xff] }
   0x9   :  { %104 = vmatpush.msra.mxu2 %v28_v10  ;;  %1188 = vmatmul.msk.f32.vlgmr.msra.gmra.mxu0 %vm36_vm0, %v1408_v13  ;;  %v1205_v24 = vld [vmem:[%s1749_s1 + $0xc8] sm:$0xff] }
   0xa   :  { %127 = vmatpush.msra.mxu3 %v32_v12  ;;  %1192 = vmatmul.msk.f32.vlgmr.msra.gmra.mxu2 %vm36_vm0, %v1408_v13 }
   0xb   :  { %1194 = vmatmul.msk.f32.vlgmr.msra.gmra.mxu3 %vm36_vm0, %v1408_v13  ;;  %164 = vmatpush.msrb.mxu0 %v1199_v15 }
   0xc   :  { %210 = vmatpush.msrb.mxu2 %v1207_v16  ;;  %233 = vmatpush.msrb.mxu3 %v1211_v17 }
   0xd   :  { %80 = vmatpush.msra.mxu1 %v25_v18  ;;  %165 = vmatpush.msrb.mxu0 %v1198_v19 }
   0xe   :  { %9 = vsyncpa [#allocation3], 0  ;;  %v1452_v25 = vld [vmem:[%s1748_s0 + $0x8] sm:$0xff]  ;;  %211 = vmatpush.msrb.mxu2 %v1206_v20  ;;  %234 = vmatpush.msrb.mxu3 %v1210_v21  ;;  %v1196_v27 = vld [vmem:[%s1749_s1 + $0x80] sm:$0xff]  ;;  %vm367_vm1 = vcmask 130048   ;;  %v353_v7 = vlaneseq  ;;  %vm478_vm3 = vcmask 64512  }
   0xf   :  { %v1209_v26 = vld [vmem:[%s1749_s1 + $0xe8] sm:$0xff]  ;;  %81 = vmatpush.msra.mxu1 %v24_v22  ;;  %166 = vmatpush.msrb.mxu0 %v1197_v23  ;;  %v1204_v28 = vld [vmem:[%s1749_s1 + $0xc0] sm:$0xff]  ;;  %v1203_v30 = vld [vmem:[%s1749_s1 + $0xb8] sm:$0xff]  ;;  %s1176_s27 = sshll.u32 %s1752_s4, 4  ;;  %s1339_s28 = smov 128   ;;  %s1177_s27 = int_to_ptr.hbm [resolvable:$true] %s1176_s27 }
  0x10   :  { %1190 = vmatmul.msk.f32.vlgmr.msra.gmra.mxu1 %vm36_vm0, %v1408_v13  ;;  %212 = vmatpush.msrb.mxu2 %v1205_v24  ;;  %v1208_v29 = vld [vmem:[%s1749_s1 + $0xe0] sm:$0xff]  ;;  %v1223_v31 = vld [vmem:[%s1749_s1 + $0x118] sm:$0xff]  ;;  %v1202_v32 = vld [vmem:[%s1749_s1 + $0xb0] sm:$0xff]  ;;  %v354_v8 = vshrl.u32 %v353_v7, 7  ;;  %v356_v9 = vand.u32 127, %v353_v7  ;;  %s1340_s29 = smov 8  }
  0x11   :  { %1189 = vmatmul.msk.f32.gmra.mxu0 %vm36_vm0, %v1452_v25  ;;  %235 = vmatpush.msrb.mxu3 %v1209_v26  ;;  %v1222_v33 = vld [vmem:[%s1749_s1 + $0x110] sm:$0xff]  ;;  %v1201_v34 = vld [vmem:[%s1749_s1 + $0xa8] sm:$0xff]  ;;  %v1200_v35 = vld [vmem:[%s1749_s1 + $0xa0] sm:$0xff] }
  0x12   :  { %1193 = vmatmul.msk.f32.gmra.mxu2 %vm36_vm0, %v1452_v25  ;;  %167 = vmatpush.msrb.mxu0 %v1196_v27  ;;  %v1221_v36 = vld [vmem:[%s1749_s1 + $0x108] sm:$0xff]  ;;  %v1220_v37 = vld [vmem:[%s1749_s1 + $0x100] sm:$0xff]  ;;  %v1231_v38 = vld [vmem:[%s1749_s1 + $0x158] sm:$0xff]  ;;  %vm1596_vm2 = vcmp.gt.s32.totalorder %v356_v9, %v354_v8 }
  0x13   :  { %1195 = vmatmul.msk.f32.gmra.mxu3 %vm36_vm0, %v1452_v25  ;;  %213 = vmatpush.msrb.mxu2 %v1204_v28  ;;  %v1235_v39 = vld [vmem:[%s1749_s1 + $0x178] sm:$0xff]  ;;  %v1230_v41 = vld [vmem:[%s1749_s1 + $0x150] sm:$0xff]  ;;  %v1229_v44 = vld [vmem:[%s1749_s1 + $0x148] sm:$0xff] }
  0x14   :  { %236 = vmatpush.msrb.mxu3 %v1208_v29  ;;  %187 = vmatpush.msrb.mxu1 %v1203_v30  ;;  %v1227_v40 = vld [vmem:[%s1749_s1 + $0x138] sm:$0xff]  ;;  %v1234_v42 = vld [vmem:[%s1749_s1 + $0x170] sm:$0xff]  ;;  %v1233_v45 = vld [vmem:[%s1749_s1 + $0x168] sm:$0xff] }
  0x15   :  { %273 = vmatpush.msra.mxu0 %v1223_v31  ;;  %319 = vmatpush.msra.mxu2 %v1231_v38  ;;  %v1226_v43 = vld [vmem:[%s1749_s1 + $0x130] sm:$0xff]  ;;  %v1225_v46 = vld [vmem:[%s1749_s1 + $0x128] sm:$0xff]  ;;  %v1228_v47 = vld [vmem:[%s1749_s1 + $0x140] sm:$0xff] }
  0x16   :  { %188 = vmatpush.msrb.mxu1 %v1202_v32  ;;  %342 = vmatpush.msra.mxu3 %v1235_v39  ;;  %v1232_v48 = vld [vmem:[%s1749_s1 + $0x160] sm:$0xff]  ;;  %v1619_v26 = vld [vmem:[%s1750_s2 + $0x8] sm:$0xff]  ;;  %v1631_v28 = vld [vmem:[%s1750_s2 + $0x18] sm:$0xff] }
  0x17   :  { %274 = vmatpush.msra.mxu0 %v1222_v33  ;;  %320 = vmatpush.msra.mxu2 %v1230_v41  ;;  %v1224_v49 = vld [vmem:[%s1749_s1 + $0x120] sm:$0xff]  ;;  %v1637_v29 = vld [vmem:[%s1750_s2 + $0x10] sm:$0xff]  ;;  %v1643_v30 = vld [vmem:[%s1750_s2 + $0x28] sm:$0xff] }
  0x18   :  { %1191 = vmatmul.msk.f32.gmra.mxu1 %vm36_vm0, %v1452_v25  ;;  %343 = vmatpush.msra.mxu3 %v1234_v42  ;;  %v1625_v27 = vld [vmem:[%s1750_s2] sm:$0xff]  ;;  %v1655_v32 = vld [vmem:[%s1750_s2 + $0x38] sm:$0xff]  ;;  %v1660_v33 = vld [vmem:[%s1750_s2 + $0x30] sm:$0xff] }
  0x19   :  { %1212 = vmatmul.msk.f32.vlgmr.msrb.gmra.mxu0 %vm36_vm0, %v1408_v13  ;;  %189 = vmatpush.msrb.mxu1 %v1201_v34  ;;  %v1649_v31 = vld [vmem:[%s1750_s2 + $0x20] sm:$0xff] }
  0x1a   :  { %1216 = vmatmul.msk.f32.vlgmr.msrb.gmra.mxu2 %vm36_vm0, %v1408_v13  ;;  %275 = vmatpush.msra.mxu0 %v1221_v36 }
  0x1b   :  { %1218 = vmatmul.msk.f32.vlgmr.msrb.gmra.mxu3 %vm36_vm0, %v1408_v13  ;;  %190 = vmatpush.msrb.mxu1 %v1200_v35 }
  0x1c   :  { %276 = vmatpush.msra.mxu0 %v1220_v37  ;;  %321 = vmatpush.msra.mxu2 %v1229_v44 }
  0x1d   :  { %296 = vmatpush.msra.mxu1 %v1227_v40  ;;  %344 = vmatpush.msra.mxu3 %v1233_v45 }
  0x1e   :  { %322 = vmatpush.msra.mxu2 %v1228_v47 }
  0x1f   :  { %297 = vmatpush.msra.mxu1 %v1226_v43  ;;  %345 = vmatpush.msra.mxu3 %v1232_v48 }
  0x20   :  { %1214 = vmatmul.msk.f32.vlgmr.msrb.gmra.mxu1 %vm36_vm0, %v1408_v13 }
  0x21   :  { %1213 = vmatmul.msk.f32.gmra.mxu0 %vm36_vm0, %v1452_v25  ;;  %298 = vmatpush.msra.mxu1 %v1225_v46 }
  0x22   :  { %1217 = vmatmul.msk.f32.gmra.mxu2 %vm36_vm0, %v1452_v25 }
  0x23   :  { %1219 = vmatmul.msk.f32.gmra.mxu3 %vm36_vm0, %v1452_v25  ;;  %299 = vmatpush.msra.mxu1 %v1224_v49 }
  0x28   :  { %1215 = vmatmul.msk.f32.gmra.mxu1 %vm36_vm0, %v1452_v25 }
  0x29   :  { %1236 = vmatmul.msk.f32.vlgmr.msra.gmra.mxu0 %vm36_vm0, %v1408_v13 }
  0x2a   :  { %1240 = vmatmul.msk.f32.vlgmr.msra.gmra.mxu2 %vm36_vm0, %v1408_v13 }
  0x2b   :  { %1242 = vmatmul.msk.f32.vlgmr.msra.gmra.mxu3 %vm36_vm0, %v1408_v13 }
  0x30   :  { %1238 = vmatmul.msk.f32.vlgmr.msra.gmra.mxu1 %vm36_vm0, %v1408_v13 }
  0x31   :  { %1237 = vmatmul.msk.f32.gmra.mxu0 %vm36_vm0, %v1452_v25 }
  0x32   :  { %1241 = vmatmul.msk.f32.gmra.mxu2 %vm36_vm0, %v1452_v25 }
  0x33   :  { %1243 = vmatmul.msk.f32.gmra.mxu3 %vm36_vm0, %v1452_v25 }
  0x38   :  { %1239 = vmatmul.msk.f32.gmra.mxu1 %vm36_vm0, %v1452_v25 }
  0x86   :  { %v60_v50 = vpop.f32.mrf.mxu0 }
  0x8d   :  { %v106_v51 = vpop.f32.mrf.mxu2  ;;  %v83_v54 = vpop.f32.mrf.mxu1 }
  0x8e   :  { %v129_v52 = vpop.f32.mrf.mxu3  ;;  %v1568_v53 = vpop.f32.mrf.mxu0 }
  0x95   :  { %v1570_v55 = vpop.f32.mrf.mxu2  ;;  %v1574_v57 = vpop.f32.mrf.mxu1 }
  0x96   :  { %v1572_v56 = vpop.f32.mrf.mxu3  ;;  %v169_v58 = vpop.f32.mrf.mxu0 }
  0x97   :  { %1244 = vmatpush.xpose.msk.msrb.mxu0 %vm367_vm1, %v169_v58 }
  0x9a   :  { %1245 = vmatmul.msk.f32.vlgmr.msrb.gmra.mxu0 %vm367_vm1, %v60_v50 }
  0x9d   :  { %v215_v59 = vpop.f32.mrf.mxu2  ;;  %v192_v61 = vpop.f32.mrf.mxu1 }
  0x9e   :  { %v238_v60 = vpop.f32.mrf.mxu3  ;;  %1248 = vmatpush.xpose.msk.msrb.mxu2 %vm367_vm1, %v215_v59  ;;  %1246 = vmatpush.xpose.msk.msrb.mxu1 %vm367_vm1, %v192_v61  ;;  %v1584_v62 = vpop.f32.mrf.mxu0 }
  0x9f   :  { %1250 = vmatpush.xpose.msk.msrb.mxu3 %vm367_vm1, %v238_v60 }
  0xa1   :  { %1249 = vmatmul.msk.f32.vlgmr.msrb.gmra.mxu2 %vm367_vm1, %v106_v51  ;;  %1247 = vmatmul.msk.f32.vlgmr.msrb.gmra.mxu1 %vm367_vm1, %v83_v54 }
  0xa2   :  { %1251 = vmatmul.msk.f32.vlgmr.msrb.gmra.mxu3 %vm367_vm1, %v129_v52 }
  0xa5   :  { %v1586_v63 = vpop.f32.mrf.mxu1  ;;  %v1588_v1 = vpop.f32.mrf.mxu2 }
  0xa6   :  { %v278_v0 = vpop.f32.mrf.mxu0  ;;  %v1590_v2 = vpop.f32.mrf.mxu3 }
  0xa7   :  { %533 = vmatpush.msra.mxu0 %v278_v0 }
  0xa9   :  { %684 = vmatpush.msrb.mxu0 %v1619_v26 }
  0xab   :  { %685 = vmatpush.msrb.mxu0 %v1625_v27 }
  0xad   :  { %v301_v3 = vpop.f32.mrf.mxu1  ;;  %v324_v4 = vpop.f32.mrf.mxu2 }
  0xae   :  { %556 = vmatpush.msra.mxu1 %v301_v3  ;;  %v347_v5 = vpop.f32.mrf.mxu3  ;;  %579 = vmatpush.msra.mxu2 %v324_v4  ;;  %v1592_v6 = vpop.f32.mrf.mxu0 }
  0xaf   :  { %602 = vmatpush.msra.mxu3 %v347_v5 }
  0xb0   :  { %707 = vmatpush.msrb.mxu1 %v1631_v28  ;;  %730 = vmatpush.msrb.mxu2 %v1643_v30 }
  0xb1   :  { %753 = vmatpush.msrb.mxu3 %v1655_v32 }
  0xb2   :  { %708 = vmatpush.msrb.mxu1 %v1637_v29  ;;  %731 = vmatpush.msrb.mxu2 %v1649_v31 }
  0xb3   :  { %754 = vmatpush.msrb.mxu3 %v1660_v33 }
  0xb5   :  { %v1594_v10 = vpop.f32.mrf.mxu1  ;;  %v1603_v15 = vpop.f32.mrf.mxu2 }
  0xb6   :  { %v1605_v16 = vpop.f32.mrf.mxu3 }
 0x117   :  { %v391_v12 = vpop.f32.mrf.mxu0 }
 0x118   :  { %v474_v13 = vsel %vm1596_vm2, -1e+30, %v391_v12 }
 0x119   :  { %v479_v14 = vsel %vm478_vm3, %v474_v13, -inf }
 0x11a   :  { %480 = vmax.xlane.f32.xlu1 %v479_v14 }
 0x11e   :  { %v417_v17 = vpop.f32.mrf.mxu1 }
 0x11f   :  { %v475_v18 = vsel %vm1596_vm2, -1e+30, %v417_v17 }
 0x120   :  { %v482_v19 = vsel %vm478_vm3, %v475_v18, -inf }
 0x122   :  { %483 = vmax.xlane.f32.xlu1 %v482_v19 }
 0x124   :  { %v443_v20 = vpop.f32.mrf.mxu2 }
 0x125   :  { %v476_v21 = vsel %vm1596_vm2, -1e+30, %v443_v20  ;;  %v469_v23 = vpop.f32.mrf.mxu3 }
 0x126   :  { %v485_v22 = vsel %vm478_vm3, %v476_v21, -inf  ;;  %v477_v24 = vsel %vm1596_vm2, -1e+30, %v469_v23 }
 0x127   :  { %486 = vmax.xlane.f32.xlu0 %v485_v22  ;;  %v488_v25 = vsel %vm478_vm3, %v477_v24, -inf }
 0x12f   :  { %489 = vmax.xlane.f32.xlu0 %v488_v25 }
 0x18d   :  { %v481_v34 = vpop.xlane.xlu1 %480 }
 0x18e   :  { %v491_v35 = vsub.f32 %v474_v13, %v481_v34 }
 0x190   :  { %v495_v36 = vmul.f32 1.442695, %v491_v35 }
 0x192   :  { %1280 = vpow2.f32 %v495_v36 }
 0x195   :  { %v484_v37 = vpop.xlane.xlu1 %483 }
 0x196   :  { %v492_v38 = vsub.f32 %v475_v18, %v484_v37 }
 0x198   :  { %v1281_v39 = vpop.eup %1280  ;;  %v497_v40 = vmul.f32 1.442695, %v492_v38 }
 0x199   :  { %1252 = vmatmul.msk.f32.vlgmr.msra.gmra.mxu0 %vm478_vm3, %v1281_v39  ;;  %v503_v41 = vsel %vm478_vm3, %v1281_v39, 0.0 }
 0x19a   :  { %1282 = vpow2.f32 %v497_v40  ;;  %v487_v42 = vpop.xlane.xlu0 %486  ;;  %1260 = vmatpush.xpose.msk.msra.mxu0 %vm367_vm1, %v1584_v62  ;;  %504 = vadd.xlane.f32.xlu0 %v503_v41 }
 0x19b   :  { %v493_v43 = vsub.f32 %v476_v21, %v487_v42 }
 0x19d   :  { %v499_v44 = vmul.f32 1.442695, %v493_v43 }
 0x19f   :  { %1284 = vpow2.f32 %v499_v44 }
 0x1a0   :  { %v1283_v45 = vpop.eup %1282 }
 0x1a1   :  { %1253 = vmatmul.msk.f32.vlgmr.msra.gmra.mxu1 %vm478_vm3, %v1283_v45  ;;  %v506_v46 = vsel %vm478_vm3, %v1283_v45, 0.0 }
 0x1a2   :  { %v490_v47 = vpop.xlane.xlu0 %489  ;;  %1262 = vmatpush.xpose.msk.msra.mxu1 %vm367_vm1, %v1586_v63  ;;  %507 = vadd.xlane.f32.xlu1 %v506_v46 }
 0x1a3   :  { %v494_v48 = vsub.f32 %v477_v24, %v490_v47 }
 0x1a5   :  { %v1285_v49 = vpop.eup %1284  ;;  %v501_v50 = vmul.f32 1.442695, %v494_v48 }
 0x1a6   :  { %1254 = vmatmul.msk.f32.vlgmr.msra.gmra.mxu2 %vm478_vm3, %v1285_v49  ;;  %v509_v51 = vsel %vm478_vm3, %v1285_v49, 0.0 }
 0x1a7   :  { %1286 = vpow2.f32 %v501_v50  ;;  %1264 = vmatpush.xpose.msk.msra.mxu2 %vm367_vm1, %v1588_v1  ;;  %510 = vadd.xlane.f32.xlu2 %v509_v51 }
 0x1ad   :  { %v1287_v52 = vpop.eup %1286 }
 0x1ae   :  { %1255 = vmatmul.msk.f32.vlgmr.msra.gmra.mxu3 %vm478_vm3, %v1287_v52  ;;  %v512_v54 = vsel %vm478_vm3, %v1287_v52, 0.0 }
 0x1af   :  { %1266 = vmatpush.xpose.msk.msra.mxu3 %vm367_vm1, %v1590_v2  ;;  %513 = vadd.xlane.f32.xlu2 %v512_v54 }
 0x20d   :  { %v505_v58 = vpop.xlane.xlu0 %504 }
 0x20e   :  { %1288 = vrcp.f32 %v505_v58  ;;  %v618_v63 = vand.u32 2147483648, %v505_v58  ;;  %v616_v1 = vand.u32 2147483647, %v505_v58  ;;  %vm612_vm5 = vweird.f32 %v505_v58 }
 0x210   :  { %v619_v7 = vor.u32 1.1754944e-38, %v618_v63  ;;  %vm617_vm7 = vcmp.eq.f32.partialorder %v616_v1, 8.507059e+37 }
 0x214   :  { %v1289_v59 = vpop.eup %1288 }
 0x215   :  { %v608_v60 = vmul.f32 %v1289_v59, %v505_v58  ;;  %v508_v61 = vpop.xlane.xlu1 %507  ;;  %vm613_vm4 = vweird.f32 %v1289_v59 }
 0x216   :  { %1290 = vrcp.f32 %v508_v61  ;;  %vm614_vm6 = vmor %vm612_vm5, %vm613_vm4  ;;  %v535_v9 = vpop.f32.mrf.mxu0  ;;  %v632_v17 = vand.u32 2147483648, %v508_v61  ;;  %v630_v20 = vand.u32 2147483647, %v508_v61  ;;  %vm626_vm9 = vweird.f32 %v508_v61 }
 0x217   :  { %v609_v62 = vsub.f32 1.0, %v608_v60 }
 0x218   :  { %v633_v25 = vor.u32 1.1754944e-38, %v632_v17  ;;  %vm631_vm11 = vcmp.eq.f32.partialorder %v630_v20, 8.507059e+37 }
 0x219   :  { %v610_v0 = vmul.f32 %v1289_v59, %v609_v62 }
 0x21a   :  { %v511_v3 = vpop.xlane.xlu2 %510 }
 0x21b   :  { %v611_v4 = vadd.f32 %v1289_v59, %v610_v0  ;;  %1292 = vrcp.f32 %v511_v3  ;;  %v646_v35 = vand.u32 2147483648, %v511_v3  ;;  %v644_v39 = vand.u32 2147483647, %v511_v3 }
 0x21c   :  { %v1291_v5 = vpop.eup %1290  ;;  %vm640_vm13 = vweird.f32 %v511_v3 }
 0x21d   :  { %v622_v2 = vmul.f32 %v1291_v5, %v508_v61  ;;  %v615_v8 = vsel %vm614_vm6, %v1289_v59, %v611_v4  ;;  %vm627_vm8 = vweird.f32 %v1291_v5  ;;  %vm645_vm15 = vcmp.eq.f32.partialorder %v644_v39, 8.507059e+37  ;;  %v1713_v59 = vld [vmem:[%s1751_s3] ss:$0 sm:$0xff]  ;;  %s1338_s3 = smov [#allocation2]  }
 0x21e   :  { %v620_v12 = vsel %vm617_vm7, %v619_v7, %v615_v8  ;;  %vm628_vm10 = vmor %vm626_vm9, %vm627_vm8  ;;  %v558_v36 = vpop.f32.mrf.mxu1  ;;  %vm759_vm7 = vcmask 523264   ;;  %s1174_s24 = sshll.u32 %s1338_s3, 4  ;;  %s1175_s24 = int_to_ptr.vmem [resolvable:$true] %s1174_s24 }
 0x21f   :  { %v623_v13 = vsub.f32 1.0, %v622_v2  ;;  %v663_v14 = vmul.f32 %v620_v12, %v535_v9 }
 0x221   :  { %v1293_v18 = vpop.eup %1292  ;;  %v624_v19 = vmul.f32 %v1291_v5, %v623_v13  ;;  %1256 = vmatmul.msk.f32.vlgmr.msrb.gmra.mxu0 %vm367_vm1, %v663_v14 }
 0x222   :  { %v636_v21 = vmul.f32 %v1293_v18, %v511_v3  ;;  %v514_v22 = vpop.xlane.xlu2 %513  ;;  %934 = vmatpush.msrb.mxu0 %v1592_v6  ;;  %vm641_vm12 = vweird.f32 %v1293_v18  ;;  %v647_v6 = vor.u32 1.1754944e-38, %v646_v35 }
 0x223   :  { %v625_v23 = vadd.f32 %v1291_v5, %v624_v19  ;;  %1294 = vrcp.f32 %v514_v22  ;;  %vm642_vm14 = vmor %vm640_vm13, %vm641_vm12  ;;  %v660_v49 = vand.u32 2147483648, %v514_v22  ;;  %v658_v51 = vand.u32 2147483647, %v514_v22 }
 0x224   :  { %v637_v24 = vsub.f32 1.0, %v636_v21  ;;  %vm654_vm4 = vweird.f32 %v514_v22 }
 0x225   :  { %v629_v34 = vsel %vm628_vm10, %v1291_v5, %v625_v23  ;;  %vm659_vm6 = vcmp.eq.f32.partialorder %v658_v51, 8.507059e+37 }
 0x226   :  { %v634_v37 = vsel %vm631_vm11, %v633_v25, %v629_v34  ;;  %v638_v38 = vmul.f32 %v1293_v18, %v637_v24 }
 0x227   :  { %v664_v40 = vmul.f32 %v634_v37, %v558_v36 }
 0x228   :  { %v639_v41 = vadd.f32 %v1293_v18, %v638_v38 }
 0x229   :  { %v1295_v42 = vpop.eup %1294  ;;  %1257 = vmatmul.msk.f32.vlgmr.msrb.gmra.mxu1 %vm367_vm1, %v664_v40  ;;  %1261 = vmatmul.msk.f32.vlgmr.msra.gmra.mxu0 %vm367_vm1, %v1568_v53  ;;  %v581_v45 = vpop.f32.mrf.mxu2 }
 0x22a   :  { %v650_v43 = vmul.f32 %v1295_v42, %v514_v22  ;;  %v643_v44 = vsel %vm642_vm14, %v1293_v18, %v639_v41  ;;  %957 = vmatpush.msrb.mxu1 %v1594_v10  ;;  %1085 = vmatpush.msra.mxu0 %v1619_v26  ;;  %vm655_vm0 = vweird.f32 %v1295_v42  ;;  %v661_v10 = vor.u32 1.1754944e-38, %v660_v49 }
 0x22b   :  { %v648_v46 = vsel %vm645_vm15, %v647_v6, %v643_v44  ;;  %vm656_vm5 = vmor %vm654_vm4, %vm655_vm0 }
 0x22c   :  { %v651_v47 = vsub.f32 1.0, %v650_v43  ;;  %v665_v48 = vmul.f32 %v648_v46, %v581_v45  ;;  %1086 = vmatpush.msra.mxu0 %v1625_v27 }
 0x22e   :  { %1258 = vmatmul.msk.f32.vlgmr.msrb.gmra.mxu2 %vm367_vm1, %v665_v48  ;;  %v652_v50 = vmul.f32 %v1295_v42, %v651_v47 }
 0x22f   :  { %980 = vmatpush.msrb.mxu2 %v1603_v15 }
 0x230   :  { %v653_v53 = vadd.f32 %v1295_v42, %v652_v50 }
 0x231   :  { %1263 = vmatmul.msk.f32.vlgmr.msra.gmra.mxu1 %vm367_vm1, %v1574_v57  ;;  %v604_v27 = vpop.f32.mrf.mxu3 }
 0x232   :  { %v657_v26 = vsel %vm656_vm5, %v1295_v42, %v653_v53  ;;  %1108 = vmatpush.msra.mxu1 %v1631_v28 }
 0x233   :  { %v662_v52 = vsel %vm659_vm6, %v661_v10, %v657_v26 }
 0x234   :  { %v666_v54 = vmul.f32 %v662_v52, %v604_v27  ;;  %1109 = vmatpush.msra.mxu1 %v1637_v29 }
 0x236   :  { %1259 = vmatmul.msk.f32.vlgmr.msrb.gmra.mxu3 %vm367_vm1, %v666_v54  ;;  %1265 = vmatmul.msk.f32.vlgmr.msra.gmra.mxu2 %vm367_vm1, %v1570_v55 }
 0x237   :  { %1003 = vmatpush.msrb.mxu3 %v1605_v16  ;;  %1131 = vmatpush.msra.mxu2 %v1643_v30 }
 0x239   :  { %1132 = vmatpush.msra.mxu2 %v1649_v31 }
 0x23e   :  { %1267 = vmatmul.msk.f32.vlgmr.msra.gmra.mxu3 %vm367_vm1, %v1572_v56 }
 0x23f   :  { %1154 = vmatpush.msra.mxu3 %v1655_v32 }
 0x241   :  { %1155 = vmatpush.msra.mxu3 %v1660_v33 }
 0x29e   :  { %v687_v57 = vpop.f32.mrf.mxu0 }
 0x29f   :  { %v760_v31 = vsel %vm759_vm7, %v687_v57, 0.0 }
 0x2a6   :  { %v795_v15 = vpop.f32.mrf.mxu0  ;;  %v710_v16 = vpop.f32.mrf.mxu1 }
 0x2a7   :  { %v876_v28 = vsel %vm1596_vm2, -1e+30, %v795_v15  ;;  %v761_v30 = vsel %vm759_vm7, %v710_v16, 0.0 }
 0x2a8   :  { %v880_v55 = vsel %vm478_vm3, %v876_v28, -inf  ;;  %v762_v32 = vadd.f32 %v761_v30, %v760_v31 }
 0x2a9   :  { %881 = vmax.xlane.f32.xlu1 %v880_v55 }
 0x2ae   :  { %v821_v1 = vpop.f32.mrf.mxu1 }
 0x2af   :  { %v877_v4 = vsel %vm1596_vm2, -1e+30, %v821_v1 }
 0x2b0   :  { %v883_v8 = vsel %vm478_vm3, %v877_v4, -inf }
 0x2b1   :  { %v733_v29 = vpop.f32.mrf.mxu2 }
 0x2b2   :  { %v763_v56 = vsel %vm759_vm7, %v733_v29, 0.0 }
 0x2b3   :  { %v764_v58 = vadd.f32 %v763_v56, %v762_v32 }
 0x2b9   :  { %v756_v33 = vpop.f32.mrf.mxu3  ;;  %v847_v60 = vpop.f32.mrf.mxu2 }
 0x2ba   :  { %v765_v61 = vsel %vm759_vm7, %v756_v33, 0.0  ;;  %v878_v62 = vsel %vm1596_vm2, -1e+30, %v847_v60 }
 0x2bb   :  { %v766_v63 = vadd.f32 %v765_v61, %v764_v58  ;;  %v886_v0 = vsel %vm478_vm3, %v878_v62, -inf }
 0x2bc   :  { %887 = vmax.xlane.f32.xlu2 %v886_v0 }
 0x2bd   :  { %v770_v3 = vadd.f32 %v1713_v59, %v766_v63 }
 0x2bf   :  { %771 = vst.msk [vmem:[#allocation2] sm:$0xff] %vm759_vm7, %v770_v3 }
 0x2c1   :  { %v873_v5 = vpop.f32.mrf.mxu3 }
 0x2c2   :  { %v879_v7 = vsel %vm1596_vm2, -1e+30, %v873_v5 }
 0x2c3   :  { %v889_v2 = vsel %vm478_vm3, %v879_v7, -inf }
 0x2c4   :  { %890 = vmax.xlane.f32.xlu0 %v889_v2  ;;  %884 = vmax.xlane.f32.xlu2 %v883_v8 }
 0x31c   :  { %v882_v9 = vpop.xlane.xlu1 %881 }
 0x31d   :  { %v892_v12 = vsub.f32 %v876_v28, %v882_v9 }
 0x31f   :  { %v896_v13 = vmul.f32 1.442695, %v892_v12 }
 0x321   :  { %1296 = vpow2.f32 %v896_v13 }
 0x327   :  { %v1297_v14 = vpop.eup %1296 }
 0x328   :  { %1268 = vmatmul.msk.f32.vlgmr.msrb.gmra.mxu0 %vm478_vm3, %v1297_v14  ;;  %v904_v17 = vsel %vm478_vm3, %v1297_v14, 0.0 }
 0x329   :  { %905 = vadd.xlane.f32.xlu2 %v904_v17 }
 0x32f   :  { %v888_v18 = vpop.xlane.xlu2 %887 }
 0x330   :  { %v894_v19 = vsub.f32 %v878_v62, %v888_v18 }
 0x332   :  { %v900_v11 = vmul.f32 1.442695, %v894_v19 }
 0x334   :  { %1298 = vpow2.f32 %v900_v11 }
 0x337   :  { %v891_v20 = vpop.xlane.xlu0 %890  ;;  %v885_v21 = vpop.xlane.xlu2 %884 }
 0x338   :  { %v895_v22 = vsub.f32 %v879_v7, %v891_v20  ;;  %v893_v23 = vsub.f32 %v877_v4, %v885_v21 }
 0x33a   :  { %v1299_v24 = vpop.eup %1298  ;;  %v902_v25 = vmul.f32 1.442695, %v895_v22  ;;  %v898_v34 = vmul.f32 1.442695, %v893_v23 }
 0x33b   :  { %1270 = vmatmul.msk.f32.vlgmr.msrb.gmra.mxu2 %vm478_vm3, %v1299_v24  ;;  %v910_v35 = vsel %vm478_vm3, %v1299_v24, 0.0 }
 0x33c   :  { %1300 = vpow2.f32 %v902_v25  ;;  %911 = vadd.xlane.f32.xlu0 %v910_v35 }
 0x33d   :  { %1302 = vpow2.f32 %v898_v34 }
 0x342   :  { %v1301_v36 = vpop.eup %1300 }
 0x343   :  { %v1303_v37 = vpop.eup %1302  ;;  %1271 = vmatmul.msk.f32.vlgmr.msrb.gmra.mxu3 %vm478_vm3, %v1301_v36  ;;  %v913_v38 = vsel %vm478_vm3, %v1301_v36, 0.0 }
 0x344   :  { %1269 = vmatmul.msk.f32.vlgmr.msrb.gmra.mxu1 %vm478_vm3, %v1303_v37  ;;  %914 = vadd.xlane.f32.xlu1 %v913_v38  ;;  %v907_v39 = vsel %vm478_vm3, %v1303_v37, 0.0 }
 0x345   :  { %908 = vadd.xlane.f32.xlu0 %v907_v39 }
 0x39c   :  { %v906_v40 = vpop.xlane.xlu2 %905 }
 0x39d   :  { %1304 = vrcp.f32 %v906_v40  ;;  %v1019_v43 = vand.u32 2147483648, %v906_v40  ;;  %v1017_v45 = vand.u32 2147483647, %v906_v40  ;;  %vm1013_vm8 = vweird.f32 %v906_v40 }
 0x39f   :  { %v1020_v47 = vor.u32 1.1754944e-38, %v1019_v43  ;;  %vm1018_vm10 = vcmp.eq.f32.partialorder %v1017_v45, 8.507059e+37 }
 0x3a3   :  { %v1305_v41 = vpop.eup %1304 }
 0x3a4   :  { %v1009_v42 = vmul.f32 %v1305_v41, %v906_v40  ;;  %vm1014_vm2 = vweird.f32 %v1305_v41 }
 0x3a5   :  { %vm1015_vm9 = vmor %vm1013_vm8, %vm1014_vm2  ;;  %v936_v49 = vpop.f32.mrf.mxu0 }
 0x3a6   :  { %v1010_v6 = vsub.f32 1.0, %v1009_v42 }
 0x3a8   :  { %v1011_v44 = vmul.f32 %v1305_v41, %v1010_v6 }
 0x3aa   :  { %v1012_v46 = vadd.f32 %v1305_v41, %v1011_v44 }
 0x3ac   :  { %v1016_v48 = vsel %vm1015_vm9, %v1305_v41, %v1012_v46 }
 0x3ad   :  { %v1021_v50 = vsel %vm1018_vm10, %v1020_v47, %v1016_v48 }
 0x3ae   :  { %v1064_v51 = vmul.f32 %v1021_v50, %v936_v49 }
 0x3af   :  { %v912_v53 = vpop.xlane.xlu0 %911 }
 0x3b0   :  { %1306 = vrcp.f32 %v912_v53  ;;  %1272 = vmatmul.msk.f32.vlgmr.msra.gmra.mxu0 %vm367_vm1, %v1064_v51  ;;  %v1047_v57 = vand.u32 2147483648, %v912_v53  ;;  %v1045_v28 = vand.u32 2147483647, %v912_v53  ;;  %vm1041_vm11 = vweird.f32 %v912_v53 }
 0x3b2   :  { %v1048_v29 = vor.u32 1.1754944e-38, %v1047_v57  ;;  %vm1046_vm13 = vcmp.eq.f32.partialorder %v1045_v28, 8.507059e+37 }
 0x3b6   :  { %v1307_v10 = vpop.eup %1306 }
 0x3b7   :  { %v1037_v26 = vmul.f32 %v1307_v10, %v912_v53  ;;  %v915_v27 = vpop.xlane.xlu1 %914  ;;  %vm1042_vm3 = vweird.f32 %v1307_v10 }
 0x3b8   :  { %v909_v52 = vpop.xlane.xlu0 %908  ;;  %1308 = vrcp.f32 %v915_v27  ;;  %vm1043_vm12 = vmor %vm1041_vm11, %vm1042_vm3  ;;  %v1061_v63 = vand.u32 2147483648, %v915_v27  ;;  %v1059_v3 = vand.u32 2147483647, %v915_v27  ;;  %vm1055_vm0 = vweird.f32 %v915_v27 }
 0x3b9   :  { %v1038_v54 = vsub.f32 1.0, %v1037_v26  ;;  %1310 = vrcp.f32 %v909_v52  ;;  %v1033_v0 = vand.u32 2147483648, %v909_v52  ;;  %v1031_v5 = vand.u32 2147483647, %v909_v52 }
 0x3ba   :  { %vm1027_vm4 = vweird.f32 %v909_v52  ;;  %v1062_v8 = vor.u32 1.1754944e-38, %v1061_v63  ;;  %vm1060_vm2 = vcmp.eq.f32.partialorder %v1059_v3, 8.507059e+37 }
 0x3bb   :  { %v1039_v15 = vmul.f32 %v1307_v10, %v1038_v54  ;;  %v1034_v9 = vor.u32 1.1754944e-38, %v1033_v0  ;;  %vm1032_vm8 = vcmp.eq.f32.partialorder %v1031_v5, 8.507059e+37 }
 0x3bd   :  { %v1040_v55 = vadd.f32 %v1307_v10, %v1039_v15 }
 0x3be   :  { %v1309_v16 = vpop.eup %1308  ;;  %v982_v58 = vpop.f32.mrf.mxu2 }
 0x3bf   :  { %v1311_v30 = vpop.eup %1310  ;;  %v1051_v31 = vmul.f32 %v1309_v16, %v915_v27  ;;  %v1044_v56 = vsel %vm1043_vm12, %v1307_v10, %v1040_v55  ;;  %vm1056_vm14 = vweird.f32 %v1309_v16 }
 0x3c0   :  { %v1023_v32 = vmul.f32 %v1311_v30, %v909_v52  ;;  %v1049_v33 = vsel %vm1046_vm13, %v1048_v29, %v1044_v56  ;;  %vm1028_vm15 = vweird.f32 %v1311_v30  ;;  %vm1057_vm5 = vmor %vm1055_vm0, %vm1056_vm14 }
 0x3c1   :  { %v1052_v60 = vsub.f32 1.0, %v1051_v31  ;;  %v1066_v61 = vmul.f32 %v1049_v33, %v982_v58  ;;  %vm1029_vm6 = vmor %vm1027_vm4, %vm1028_vm15  ;;  %v959_v18 = vpop.f32.mrf.mxu1 }
 0x3c2   :  { %v1024_v62 = vsub.f32 1.0, %v1023_v32 }
 0x3c3   :  { %v1053_v1 = vmul.f32 %v1309_v16, %v1052_v60  ;;  %1274 = vmatmul.msk.f32.vlgmr.msra.gmra.mxu2 %vm367_vm1, %v1066_v61 }
 0x3c4   :  { %v1025_v4 = vmul.f32 %v1311_v30, %v1024_v62 }
 0x3c5   :  { %v1054_v7 = vadd.f32 %v1309_v16, %v1053_v1 }
 0x3c6   :  { %v1026_v2 = vadd.f32 %v1311_v30, %v1025_v4  ;;  %v1005_v14 = vpop.f32.mrf.mxu3 }
 0x3c7   :  { %v1058_v12 = vsel %vm1057_vm5, %v1309_v16, %v1054_v7 }
 0x3c8   :  { %v1030_v13 = vsel %vm1029_vm6, %v1311_v30, %v1026_v2  ;;  %v1063_v17 = vsel %vm1060_vm2, %v1062_v8, %v1058_v12 }
 0x3c9   :  { %v1035_v19 = vsel %vm1032_vm8, %v1034_v9, %v1030_v13  ;;  %v1067_v11 = vmul.f32 %v1063_v17, %v1005_v14 }
 0x3ca   :  { %v1065_v20 = vmul.f32 %v1035_v19, %v959_v18 }
 0x3cb   :  { %1275 = vmatmul.msk.f32.vlgmr.msra.gmra.mxu3 %vm367_vm1, %v1067_v11 }
 0x3cc   :  { %1273 = vmatmul.msk.f32.vlgmr.msra.gmra.mxu1 %vm367_vm1, %v1065_v20 }
 0x42d   :  { %v1088_v21 = vpop.f32.mrf.mxu0 }
 0x42e   :  { %v1160_v23 = vsel %vm759_vm7, %v1088_v21, 0.0 }
 0x446   :  { %v1134_v24 = vpop.f32.mrf.mxu2 }
 0x447   :  { %v1163_v35 = vsel %vm759_vm7, %v1134_v24, 0.0 }
 0x449   :  { %v1111_v22 = vpop.f32.mrf.mxu1 }
 0x44a   :  { %v1161_v25 = vsel %vm759_vm7, %v1111_v22, 0.0 }
 0x44b   :  { %v1162_v34 = vadd.f32 %v1161_v25, %v1160_v23 }
 0x44d   :  { %v1164_v37 = vadd.f32 %v1163_v35, %v1162_v34 }
 0x44e   :  { %v1157_v36 = vpop.f32.mrf.mxu3 }
 0x44f   :  { %v1165_v38 = vsel %vm759_vm7, %v1157_v36, 0.0 }
 0x450   :  { %v1166_v39 = vadd.f32 %v1165_v38, %v1164_v37 }
 0x452   :  { %v1167_v40 = vadd.f32 %v1713_v59, %v1166_v39 }
 0x454   :  { %1169 = vst.msk [vmem:[#allocation2 + $0x8] sm:$0xff] %vm759_vm7, %v1167_v40 }
 0x455   :  { %1182 = dma.vmem_to_hbm [thread:$0]  %s1175_s24, 256, %s1177_s27, [#allocation3], %s1339_s28, %s1339_s28, %s1340_s29  }
 0x456   :  { %1336 = dma.done.wait [#allocation3], 256  }
 0x457   :  { %1337 = vsyncadd [#allocation3], 4294967040 }
 0x458   :  { %1187 = vsyncpa [#allocation3], 1 }

</bundles_post_ra>
